<compile_context>
chip_gen: v7x
topology: tpu7x:2x2x1
jax: 0.10.0
libtpu: 0.0.40
codegen_flags: <defaults>
</compile_context>

<pallas_src>
import jax
import jax.numpy as jnp
from jax.experimental import pallas as pl
from jax.experimental.pallas import tpu as pltpu


# ----------------------------------------------------------------------------
# Helpers
# ----------------------------------------------------------------------------
def _vmem_capacity_bytes():
    """Physical per-core VMEM; fall back to 128 MiB (v5e/v6e) if the query fails."""
    try:
        info = pltpu.get_tpu_info()
        cap = getattr(info, "vmem_capacity_bytes", None)
        if cap:
            return int(cap)
    except Exception:
        pass
    return 128 * 1024 * 1024


def _pick_spatial_tile(total, target, align=128):
    """Largest lane tile that is either the full extent or a multiple of 128 dividing it."""
    if total <= target or total % align != 0:
        return total
    t = (target // align) * align
    while t >= align:
        if total % t == 0:
            return t
        t -= align
    return total


# ----------------------------------------------------------------------------
# Kernel 1: per-(batch, split) partial sum / sum-of-squares of (x - pre_shift).
# ----------------------------------------------------------------------------
def _stats_kernel(pre_ref, x_ref, sum_ref, sq_ref):
    @pl.when(pl.program_id(2) == 0)   # new (batch, split) accumulator -> reset
    def _():
        sum_ref[...] = jnp.zeros_like(sum_ref)
        sq_ref[...] = jnp.zeros_like(sq_ref)

    x = x_ref[0].astype(jnp.float32)            # (C_in, tile_s)
    xc = x - pre_ref[...]                       # per-channel pre-shift (cancellation guard)
    sum_ref[0, 0] += jnp.sum(xc, axis=-1, keepdims=True)     # (C_in, 1)
    sq_ref[0, 0] += jnp.sum(xc * xc, axis=-1, keepdims=True)


# ----------------------------------------------------------------------------
# Kernel 2: fused BN-normalize + LeakyReLU(0.2) + 1x1-conv-as-matmul (NCHW layout).
# ----------------------------------------------------------------------------
def _fused_kernel(aff_ref, w_ref, x_ref, o_ref):
    scale = aff_ref[0]                          # (C_in, 1) folded BN scale
    shift = aff_ref[1]                          # (C_in, 1) folded BN shift
    x = x_ref[0].astype(jnp.float32)            # (C_in, tile_s)
    y = x * scale + shift                       # folded batchnorm
    y = jnp.maximum(y, 0.2 * y)                 # LeakyReLU(0.2): single VPU max
    # MXU matmul: (C_out, C_in) @ (C_in, tile_s); operands in w_ref.dtype
    # (bf16 by default), f32 accumulate.
    o_ref[0] = jnp.dot(
        w_ref[...], y.astype(w_ref.dtype),
        preferred_element_type=jnp.float32,
    ).astype(o_ref.dtype)


# ----------------------------------------------------------------------------
# Wrapper
# ----------------------------------------------------------------------------
def transition_layer(x_nchw, gamma, beta, conv_w, *, eps=1e-5,
                     running_mean=None, running_var=None,
                     spatial_tile=None, mxu_dtype=jnp.bfloat16, out_dtype=None):
    """x_nchw: (N, C_in, H, W).  conv_w: (C_out, C_in) (1x1 kernel squeezed).

    Training-mode BN (batch stats) by default; pass running_mean/running_var for the
    eval path (skips the statistics pass entirely).
    """
    N, C_in, H, W = x_nchw.shape
    C_out = conv_w.shape[0]
    HW = H * W
    M = N * HW
    out_dtype = x_nchw.dtype if out_dtype is None else out_dtype

    # Free, contiguous reshape -- no transpose through HBM.
    x3d = x_nchw.reshape(N, C_in, HW)
    x_bytes = jnp.dtype(x3d.dtype).itemsize
    w_bytes = jnp.dtype(mxu_dtype).itemsize
    out_bytes = jnp.dtype(out_dtype).itemsize

    # ---- generation-aware VMEM budget and spatial tile -------------------------------
    vmem_cap = _vmem_capacity_bytes()
    budget = (vmem_cap * 3) // 4                      # ~75%: headroom for compiler scratch
    is_small_vmem = vmem_cap <= 64 * 1024 * 1024      # v7x: 64 MiB per TensorCore

    if spatial_tile is None:
        spatial_tile = (1024 if (is_small_vmem and C_in >= 1024)
                        else 2048 if is_small_vmem else 8192)

    def fused_footprint(t):
        return (2 * C_in * t * x_bytes                # double-buffered input block
                + 2 * C_out * t * out_bytes           # double-buffered output block
                + C_in * t * (4 + w_bytes)            # f32 BN/LReLU temp + mxu-dtype cast
                + 2 * C_out * C_in * w_bytes          # resident weight (double-buffered)
                + 2 * 2 * C_in * 128 * 4)             # packed affine, lane-padded

    tile_s = _pick_spatial_tile(HW, spatial_tile)
    while tile_s > 128 and fused_footprint(tile_s) > budget:
        nt = _pick_spatial_tile(HW, max(tile_s // 2, 128))
        if nt >= tile_s:
            break
        tile_s = nt
    n_s_tiles = HW // tile_s

    # ---- BatchNorm statistics ---------------------------------------------------------
    if running_mean is not None and running_var is not None:
        # Eval path: no statistics pass at all (saves a full read of x).
        mean = running_mean.astype(jnp.float32).reshape(C_in, 1)
        var = running_var.astype(jnp.float32).reshape(C_in, 1)
    else:
        # Cheap per-channel pre-shift (approx. mean from the first tile of batch 0) so the
        # E[x^2] - mean^2 combine in the glue does not suffer catastrophic cancellation.
        pre = jnp.mean(x3d[0, :, :tile_s].astype(jnp.float32),
                       axis=-1, keepdims=True)                      # (C_in, 1)

        # Split the spatial-tile axis so megacore sees >= 2 parallel programs even for N==1.
        P = 2 if (N % 2 == 1 and n_s_tiles % 2 == 0) else 1
        n_inner = n_s_tiles // P

        p_sums, p_sqs = pl.pallas_call(
            _stats_kernel,
            out_shape=(
                jax.ShapeDtypeStruct((N, P, C_in, 1), jnp.float32),
                jax.ShapeDtypeStruct((N, P, C_in, 1), jnp.float32),
            ),
            grid_spec=pltpu.PrefetchScalarGridSpec(
                num_scalar_prefetch=0,
                grid=(N, P, n_inner),
                in_specs=[
                    pl.BlockSpec((C_in, 1), lambda n, p, s: (0, 0)),        # pre-shift (resident)
                    pl.BlockSpec((1, C_in, tile_s),
                                 lambda n, p, s: (n, 0, p * n_inner + s)),  # x tile
                ],
                out_specs=(
                    pl.BlockSpec((1, 1, C_in, 1), lambda n, p, s: (n, p, 0, 0)),
                    pl.BlockSpec((1, 1, C_in, 1), lambda n, p, s: (n, p, 0, 0)),
                ),
            ),
            compiler_params=pltpu.CompilerParams(
                dimension_semantics=("parallel", "parallel", "arbitrary"),
                vmem_limit_bytes=int(budget),
            ),
            cost_estimate=pl.CostEstimate(
                flops=4 * M * C_in,
                transcendentals=0,
                bytes_accessed=M * C_in * x_bytes + 2 * N * P * C_in * 4,
            ),
        )(pre, x3d)

        # tiny glue: combine partials, biased variance (clamped >= 0)
        sums = jnp.sum(p_sums, axis=(0, 1))          # (C_in, 1), sum of (x - pre)
        sqs = jnp.sum(p_sqs, axis=(0, 1))
        mean_c = sums / M
        mean = pre + mean_c
        var = jnp.maximum(sqs / M - mean_c * mean_c, 0.0)

    # Fold BN stats + affine params into a single resident (2, C_in, 1) scale/shift block.
    inv_std = jax.lax.rsqrt(var + eps)
    scale = gamma.astype(jnp.float32).reshape(C_in, 1) * inv_std
    shift = beta.astype(jnp.float32).reshape(C_in, 1) - mean * scale
    affine = jnp.stack([scale, shift], axis=0)       # (2, C_in, 1)

    w = conv_w.astype(mxu_dtype)                     # (C_out, C_in), bf16 by default
    # TODO(synk): for production shapes with C_in/C_out < 128, pad channels to the MXU
    # tile (128) in the wrapper; the tiny demo channels give <1% MXU utilization.
    # TODO(synk): sweep pipeline_mode=pl.Buffered(3) on the x BlockSpec on v5e/v6e to
    # hide DMA jitter once the rest of the schedule is fixed.

    # ---- pass 2: fused normalize + leaky-relu + matmul --------------------------------
    out3d = pl.pallas_call(
        _fused_kernel,
        out_shape=jax.ShapeDtypeStruct((N, C_out, HW), out_dtype),
        grid_spec=pltpu.PrefetchScalarGridSpec(
            num_scalar_prefetch=0,
            grid=(N, n_s_tiles),
            in_specs=[
                pl.BlockSpec((2, C_in, 1), lambda n, s: (0, 0, 0)),     # packed scale/shift
                pl.BlockSpec((C_out, C_in), lambda n, s: (0, 0)),       # conv weight (resident)
                pl.BlockSpec((1, C_in, tile_s), lambda n, s: (n, 0, s)),
            ],
            out_specs=pl.BlockSpec((1, C_out, tile_s), lambda n, s: (n, 0, s)),
        ),
        compiler_params=pltpu.CompilerParams(
            dimension_semantics=("parallel", "parallel"),
            vmem_limit_bytes=int(budget),
        ),
        cost_estimate=pl.CostEstimate(
            flops=2 * M * C_in * C_out + 3 * M * C_in,
            transcendentals=0,
            bytes_accessed=(M * C_in * x_bytes + M * C_out * out_bytes
                            + C_in * C_out * w_bytes),
        ),
    )(affine, w, x3d)

    # Free reshape back to NCHW (no transpose).
    return out3d.reshape(N, C_out, H, W)


# ----------------------------------------------------------------------------
# Pure-JAX references (mirror the PyTorch forward) for correctness checks.
# ----------------------------------------------------------------------------
def _reference_train(x, gamma, beta, conv_w, eps=1e-5):
    mean = jnp.mean(x, axis=(0, 2, 3), keepdims=True)
    var = jnp.mean((x - mean) ** 2, axis=(0, 2, 3), keepdims=True)
    xn = (x - mean) * jax.lax.rsqrt(var + eps)
    xn = xn * gamma.reshape(1, -1, 1, 1) + beta.reshape(1, -1, 1, 1)
    xn = jnp.where(xn >= 0.0, xn, 0.2 * xn)
    return jnp.einsum("nchw,oc->nohw", xn, conv_w)


def _reference_eval(x, gamma, beta, rm, rv, conv_w, eps=1e-5):
    xn = (x - rm.reshape(1, -1, 1, 1)) * jax.lax.rsqrt(rv.reshape(1, -1, 1, 1) + eps)
    xn = xn * gamma.reshape(1, -1, 1, 1) + beta.reshape(1, -1, 1, 1)
    xn = jnp.where(xn >= 0.0, xn, 0.2 * xn)
    return jnp.einsum("nchw,oc->nohw", xn, conv_w)


if __name__ == "__main__":
    key = jax.random.PRNGKey(0)
    k_x, k_w, k_g, k_b, k_m, k_v = jax.random.split(key, 6)

    N, C_in, H, W = 2, 4, 16, 16
    C_out = 8

    x = jax.random.normal(k_x, (N, C_in, H, W), dtype=jnp.float32)
    conv_w = jax.random.normal(k_w, (C_out, C_in), dtype=jnp.float32) * 0.1
    gamma = 1.0 + 0.1 * jax.random.normal(k_g, (C_in,), dtype=jnp.float32)
    beta = 0.1 * jax.random.normal(k_b, (C_in,), dtype=jnp.float32)

    # ---- training-mode forward (batch statistics), f32 MXU path: tight check ----------
    ref = _reference_train(x, gamma, beta, conv_w)
    out_f32 = jax.block_until_ready(
        transition_layer(x, gamma, beta, conv_w, mxu_dtype=jnp.float32))
    assert out_f32.shape == (N, C_out, H, W)
    assert jnp.allclose(out_f32, ref, atol=1e-4, rtol=1e-4), "train f32 path mismatch"

    # ---- default performance path (bf16 MXU operands, f32 accumulate): looser check ---
    out_bf = jax.block_until_ready(transition_layer(x, gamma, beta, conv_w))
    assert out_bf.shape == (N, C_out, H, W)
    assert jnp.allclose(out_bf, ref, atol=5e-2, rtol=5e-2), "train bf16 path mismatch"

    # ---- eval-mode forward (running stats, statistics pass skipped) --------------------
    running_mean = 0.1 * jax.random.normal(k_m, (C_in,), dtype=jnp.float32)
    running_var = 1.0 + 0.1 * jax.random.uniform(k_v, (C_in,), dtype=jnp.float32)
    ref_eval = _reference_eval(x, gamma, beta, running_mean, running_var, conv_w)
    out_eval = jax.block_until_ready(
        transition_layer(x, gamma, beta, conv_w, mxu_dtype=jnp.float32,
                         running_mean=running_mean, running_var=running_var))
    assert jnp.allclose(out_eval, ref_eval, atol=1e-4, rtol=1e-4), "eval path mismatch"

    print("KERNEL_OK")
</pallas_src>

<mosaic_0001>
module attributes {stable_mosaic.version = 11 : i64} {
  func.func @_stats_kernel(%arg0: i32, %arg1: i32, %arg2: i32, %arg3: memref<4x1xf32, #tpu.memory_space<vmem>>, %arg4: memref<1x4x256xf32, #tpu.memory_space<vmem>>, %arg5: memref<1x1x4x1xf32, #tpu.memory_space<vmem>>, %arg6: memref<1x1x4x1xf32, #tpu.memory_space<vmem>>) attributes {dimension_semantics = [#tpu.dimension_semantics<parallel>, #tpu.dimension_semantics<parallel>, #tpu.dimension_semantics<arbitrary>], iteration_bounds = array<i64: 2, 1, 1>, scalar_prefetch = 0 : i64, scratch_operands = 0 : i64, tpu.core_type = #tpu.core_type<tc>, window_params = [{pipeline_mode = #tpu.pipeline_mode<synchronous>, transform_indices = @transform_0, window_bounds = array<i64: 4, 1>}, {transform_indices = @transform_1, window_bounds = array<i64: 1, 4, 256>}, {transform_indices = @transform_2, window_bounds = array<i64: 1, 1, 4, 1>}, {transform_indices = @transform_3, window_bounds = array<i64: 1, 1, 4, 1>}]} {
    %c0_i32 = arith.constant 0 : i32
    %0 = arith.cmpi eq, %arg2, %c0_i32 : i32
    %1 = arith.extui %0 : i1 to i32
    %c0_i32_0 = arith.constant 0 : i32
    %2 = arith.cmpi ne, %1, %c0_i32_0 : i32
    scf.if %2 {
      %cst_22 = arith.constant 0.000000e+00 : f32
      %25 = vector.broadcast %cst_22 : f32 to vector<1x1x4x1xf32>
      %c0_23 = arith.constant 0 : index
      %c0_24 = arith.constant 0 : index
      %c0_25 = arith.constant 0 : index
      %c0_26 = arith.constant 0 : index
      %26 = vector.load %arg5[%c0_23, %c0_24, %c0_25, %c0_26] : memref<1x1x4x1xf32, #tpu.memory_space<vmem>>, vector<1x1x4x1xf32>
      tpu.vector_store %arg5[%c0_23, %c0_24, %c0_25, %c0_26], %25 {strides = array<i32>} : memref<1x1x4x1xf32, #tpu.memory_space<vmem>>, vector<1x1x4x1xf32>,
      %cst_27 = arith.constant 0.000000e+00 : f32
      %27 = vector.broadcast %cst_27 : f32 to vector<1x1x4x1xf32>
      %c0_28 = arith.constant 0 : index
      %c0_29 = arith.constant 0 : index
      %c0_30 = arith.constant 0 : index
      %c0_31 = arith.constant 0 : index
      %28 = vector.load %arg6[%c0_28, %c0_29, %c0_30, %c0_31] : memref<1x1x4x1xf32, #tpu.memory_space<vmem>>, vector<1x1x4x1xf32>
      tpu.vector_store %arg6[%c0_28, %c0_29, %c0_30, %c0_31], %27 {strides = array<i32>} : memref<1x1x4x1xf32, #tpu.memory_space<vmem>>, vector<1x1x4x1xf32>,
    } else {
    }
    %c0 = arith.constant 0 : index
    %c0_1 = arith.constant 0 : index
    %c0_2 = arith.constant 0 : index
    %3 = vector.load %arg4[%c0, %c0_1, %c0_2] : memref<1x4x256xf32, #tpu.memory_space<vmem>>, vector<1x4x256xf32>
    %4 = vector.shape_cast %3 : vector<1x4x256xf32> to vector<4x256xf32>
    %c0_3 = arith.constant 0 : index
    %c0_4 = arith.constant 0 : index
    %5 = vector.load %arg3[%c0_3, %c0_4] : memref<4x1xf32, #tpu.memory_space<vmem>>, vector<4x1xf32>
    %6 = vector.broadcast %5 : vector<4x1xf32> to vector<4x256xf32>
    %7 = arith.subf %4, %6 : vector<4x256xf32>
    %c0_5 = arith.constant 0 : index
    %c0_6 = arith.constant 0 : index
    %c0_7 = arith.constant 0 : index
    %c0_8 = arith.constant 0 : index
    %8 = vector.load %arg5[%c0_5, %c0_6, %c0_7, %c0_8] : memref<1x1x4x1xf32, #tpu.memory_space<vmem>>, vector<1x1x4x1xf32>
    %9 = vector.shape_cast %8 : vector<1x1x4x1xf32> to vector<4x1xf32>
    %cst = arith.constant dense<0.000000e+00> : vector<4xf32>
    %10 = vector.multi_reduction <add>, %7, %cst [1] : vector<4x256xf32> to vector<4xf32>
    %11 = vector.shape_cast %10 : vector<4xf32> to vector<4x1xf32>
    %12 = arith.addf %9, %11 : vector<4x1xf32>
    %c0_9 = arith.constant 0 : index
    %c0_10 = arith.constant 0 : index
    %c0_11 = arith.constant 0 : index
    %c0_12 = arith.constant 0 : index
    %13 = vector.load %arg5[%c0_9, %c0_10, %c0_11, %c0_12] : memref<1x1x4x1xf32, #tpu.memory_space<vmem>>, vector<1x1x4x1xf32>
    %14 = vector.shape_cast %13 : vector<1x1x4x1xf32> to vector<4x1xf32>
    %15 = vector.shape_cast %12 : vector<4x1xf32> to vector<1x1x4x1xf32>
    tpu.vector_store %arg5[%c0_9, %c0_10, %c0_11, %c0_12], %15 {strides = array<i32>} : memref<1x1x4x1xf32, #tpu.memory_space<vmem>>, vector<1x1x4x1xf32>,
    %c0_13 = arith.constant 0 : index
    %c0_14 = arith.constant 0 : index
    %c0_15 = arith.constant 0 : index
    %c0_16 = arith.constant 0 : index
    %16 = vector.load %arg6[%c0_13, %c0_14, %c0_15, %c0_16] : memref<1x1x4x1xf32, #tpu.memory_space<vmem>>, vector<1x1x4x1xf32>
    %17 = vector.shape_cast %16 : vector<1x1x4x1xf32> to vector<4x1xf32>
    %18 = arith.mulf %7, %7 : vector<4x256xf32>
    %cst_17 = arith.constant dense<0.000000e+00> : vector<4xf32>
    %19 = vector.multi_reduction <add>, %18, %cst_17 [1] : vector<4x256xf32> to vector<4xf32>
    %20 = vector.shape_cast %19 : vector<4xf32> to vector<4x1xf32>
    %21 = arith.addf %17, %20 : vector<4x1xf32>
    %c0_18 = arith.constant 0 : index
    %c0_19 = arith.constant 0 : index
    %c0_20 = arith.constant 0 : index
    %c0_21 = arith.constant 0 : index
    %22 = vector.load %arg6[%c0_18, %c0_19, %c0_20, %c0_21] : memref<1x1x4x1xf32, #tpu.memory_space<vmem>>, vector<1x1x4x1xf32>
    %23 = vector.shape_cast %22 : vector<1x1x4x1xf32> to vector<4x1xf32>
    %24 = vector.shape_cast %21 : vector<4x1xf32> to vector<1x1x4x1xf32>
    tpu.vector_store %arg6[%c0_18, %c0_19, %c0_20, %c0_21], %24 {strides = array<i32>} : memref<1x1x4x1xf32, #tpu.memory_space<vmem>>, vector<1x1x4x1xf32>,
    return
  }
  func.func @transform_0(%arg0: i32, %arg1: i32, %arg2: i32) -> (i32, i32) {
    %c0_i32 = arith.constant 0 : i32
    %c0_i32_0 = arith.constant 0 : i32
    %c0_i32_1 = arith.constant 0 : i32
    return %c0_i32, %c0_i32_0 : i32, i32
  }
  func.func @transform_1(%arg0: i32, %arg1: i32, %arg2: i32) -> (i32, i32, i32) {
    %c1_i32 = arith.constant 1 : i32
    %0 = arith.muli %arg1, %c1_i32 : i32
    %1 = arith.addi %0, %arg2 : i32
    %c0_i32 = arith.constant 0 : i32
    %c0_i32_0 = arith.constant 0 : i32
    return %arg0, %c0_i32, %1 : i32, i32, i32
  }
  func.func @transform_2(%arg0: i32, %arg1: i32, %arg2: i32) -> (i32, i32, i32, i32) {
    %c0_i32 = arith.constant 0 : i32
    %c0_i32_0 = arith.constant 0 : i32
    %c0_i32_1 = arith.constant 0 : i32
    return %arg0, %arg1, %c0_i32, %c0_i32_0 : i32, i32, i32, i32
  }
  func.func @transform_3(%arg0: i32, %arg1: i32, %arg2: i32) -> (i32, i32, i32, i32) {
    %c0_i32 = arith.constant 0 : i32
    %c0_i32_0 = arith.constant 0 : i32
    %c0_i32_1 = arith.constant 0 : i32
    return %arg0, %arg1, %c0_i32, %c0_i32_0 : i32, i32, i32, i32
  }
}

</mosaic_0001>

<bundles_post_ra>
// kernel: tpu_custom_call.1
= control target key start
LH: loop header
LB: loop body
LE: loop exit
PB: predicated region body
PF: predicated region fallthrough
CT: control target
= control target key end

     0   :  { %9 = vsyncpa [#allocation3], 0  ;;  %s1024_s0 = inlined_call_operand.hbm [shape: f32[4,1], index: 0, kind: input, shape index: {}]   ;;  %s1025_s1 = inlined_call_operand.hbm [shape: f32[2,4,256], index: 1, kind: input, shape index: {}]   ;;  %s1026_s2 = inlined_call_operand.hbm [shape: f32[2,1,4,1], index: 2, kind: output, shape index: {0}]   ;;  %s1027_s3 = inlined_call_operand.hbm [shape: f32[2,1,4,1], index: 3, kind: output, shape index: {1}]  }
   0x1   :  { %10 = vsyncpa [#allocation6], 0 }
   0x2   :  { %12 = vsyncpa [#allocation6 + $0x1], 0 }
   0x3   :  { %13 = vsyncpa [#allocation4], 0 }
   0x4   :  { %15 = vsyncpa [#allocation4 + $0x1], 0 }
   0x5   :  { %16 = vsyncpa [#allocation9], 0 }
   0x6   :  { %18 = vsyncpa [#allocation9 + $0x1], 0  ;;  %s762_s12 = smov 0   ;;  %s764_s13 = smov 0  }
   0x7   :  { %s766_s14 = smov 0   ;;  %s768_s15 = smov 0  }
   0x8   :  { %s770_s16 = smov 0   ;;  %s772_s17 = smov 0  }
   0x9 LB: > { %s455_s18 = sadd.s32 4294967295, %s733_s17   ;;  %s456_s19 = sadd.s32 4294967294, %s733_s17   ;;  %s733_s17 = sphi %s772_s17, %s24_s17   ;;  %s729_s16 = sphi %s770_s16, %s1052_s16   ;;  %s725_s15 = sphi %s768_s15, %s1051_s15   ;;  %s721_s14 = sphi %s766_s14, %s1050_s14   ;;  %s717_s13 = sphi %s764_s13, %s1049_s13   ;;  %s713_s12 = sphi %s762_s12, %s1048_s12  }
   0xa   : > { %p88_p0 = scmp.ne.s32.totalorder %s717_s13, %s713_s12  ;;  %p796_p1 = scmp.eq.s32.totalorder %s455_s18, 0 }
   0xb   : > { %p800_p2 = scmp.eq.s32.totalorder %s455_s18, 1  ;;  %p120_p3 = scmp.eq.s32.totalorder %s456_s19, 1 }
   0xc   : > { %s1032_s20 = scalar_select %p796_p1, 1, 0 }
   0xd   : > { %s1033_s21 = scalar_select %p800_p2, 1, 0 }
   0xe   : > { %p806_p4 = por %p796_p1, %p88_p0  ;;  %p457_p5 = scmp.ge.s32.totalorder %s733_s17, 1 }
   0xf   : > { %p811_p6 = por %p120_p3, %p88_p0  ;;  %p155_p7 = scmp.lt.s32.totalorder %s733_s17, 3 }
  0x10   : > { %s1034_s22 = scalar_select %p806_p4, 1, 0 }
  0x11   : > { %s1035_s23 = scalar_select %p811_p6, 1, 0 }
  0x12   : > { %p816_p8 = pnand %p457_p5, %p155_p7  ;;  %s735_s25 = smov [#allocation2]  }
  0x13   : > { %s168_s26 = sshll.u32 %s735_s25, 4  ;;  %s43_s28 = sadd.s32 1, %s729_s16  ;;  %s169_s26 = int_to_ptr.vmem [resolvable:$true] %s168_s26 }
  0x14   : > { %s1036_s24 = scalar_select %p816_p8, 1, 0 }
  0x15   : > { %p485_p10 = pneg %p816_p8  ;;  %s75_s29 = sadd.s32 1, %s721_s14 }
  0x16   : > { %p831_p12 = scmp.ge.s32.totalorder %s43_s28, 2  ;;  %s557_s6 = scalar_lea.hbm %s1024_s0, 64 }
  0x17   : > { %p825_p11 = pnand %p485_p10, %p796_p1  ;;  %p558_p13 = scmp.ne.s32.totalorder %s1024_s0, %s557_s6 }
  0x18   : > { %s1038_s30 = scalar_select %p831_p12, 1, 0 }
  0x19   : > { %p559_p0 = pneg %p825_p11  ;;  %p564_p7 = scmp.lt.u32.totalorder %s557_s6, %s1024_s0 }
  0x1b   : > { %p560_p3 = pnand %p559_p0, %p558_p13 }
  0x1d   : > { %p561_p5 = pneg %p560_p3 }
  0x1f   : > { %p566_p10 = pnand %p564_p7, %p561_p5 }
  0x21   : > { %569 = shalt.err (!%p566_p10)
}
  0x22   : > { %s570_s11 = scalar_lea.vmem %s169_s26, 64  ;;  %p578_p1 = scmp.lt.s32.totalorder %s169_s26, %s169_s26 }
  0x23   : > { %p571_p9 = scmp.ne.s32.totalorder %s169_s26, %s570_s11  ;;  %p579_p8 = scmp.lt.s32.totalorder %s570_s11, %s570_s11 }
  0x25   : > { %p573_p6 = pnand %p571_p9, %p559_p0  ;;  %p580_p2 = por %p579_p8, %p578_p1 }
  0x27   : > { %p574_p4 = pneg %p573_p6 }
  0x29   : > { %p581_p12 = pnand %p580_p2, %p574_p4 }
  0x2b   : > { %584 = shalt.err (!%p581_p12)
}
  0x2c   : > { %488 = dma.hbm_to_vmem [thread:$0]  (!%p825_p11), %s1024_s0, 64, %s169_s26, [#allocation3]  }
  0x2d   : > { %p1039_p1 = scmp.ne.s32.totalorder %s1038_s30, 0  ;;  %p82_p2 = scmp.ne.s32.totalorder %s721_s14, %s717_s13 }
  0x2e   : > { %p83_p4 = scmp.eq.s32.totalorder %s733_s17, 0  ;;  %p501_p6 = scmp.lt.s32.totalorder %s733_s17, 2 }
  0x2f   : > { %s1054_s28 = smov (%p1039_p1, %s43_s28), 0  ;;  %p1040_p12 = scmp.ne.s32.totalorder %s1033_s21, 0 }
  0x30   : > { %s70_s25 = ssub.s32 %s729_s16, %s1054_s28  ;;  %p84_p9 = por %p83_p4, %p82_p2 }
  0x31   : > { %p73_p8 = scmp.eq.s32.totalorder %s70_s25, 0  ;;  %p863_p13 = por %p1040_p12, %p82_p2 }
  0x32   : > { %s179_s4 = sand.u32 1, %s721_s14   ;;  %s474_s30 = sshll.u32 %s729_s16, 7 }
  0x33   : > { %s871_s5 = scalar_select %p73_p8, %s721_s14, %s75_s29  }
  0x34   : > { %s460_s26 = sshll.u32 %s179_s4, 3  ;;  %s877_s8 = scalar_lea.hbm %s1025_s1, %s474_s30 }
  0x35   : > { %s183_s21 = scalar_lea.vmem [#allocation5], %s460_s26  ;;  %p881_p11 = pnand %p501_p6, %p84_p9 }
  0x36   : > { %s194_s9 = sshll.u32 %s183_s21, 4  ;;  %s180_s29 = scalar_lea.sflag [#allocation6], %s179_s4  ;;  %s879_s9 = int_to_ptr.vmem [resolvable:$true] %s194_s9 }
  0x37   : > { %s585_s11 = scalar_lea.hbm %s877_s8, 128  ;;  %p587_p3 = pneg %p881_p11 }
  0x38   : > { %p586_p0 = scmp.ne.s32.totalorder %s877_s8, %s585_s11  ;;  %s590_s25 = scalar_lea.hbm %s1025_s1, 256 }
  0x39   : > { %p591_p10 = scmp.lt.u32.totalorder %s877_s8, %s1025_s1  ;;  %p592_p1 = scmp.lt.u32.totalorder %s590_s25, %s585_s11 }
  0x3a   : > { %p588_p5 = pnand %p587_p3, %p586_p0  ;;  %p594_p4 = scmp.lt.u32.totalorder %s585_s11, %s877_s8 }
  0x3b   : > { %p593_p2 = por %p592_p1, %p591_p10 }
  0x3c   : > { %p589_p7 = pneg %p588_p5 }
  0x3d   : > { %p595_p6 = por %p594_p4, %p593_p2 }
  0x3f   : > { %p596_p8 = pnand %p595_p6, %p589_p7 }
  0x41   : > { %599 = shalt.err (!%p596_p8)
}
  0x42   : > { %s600_s4 = scalar_lea.vmem %s879_s9, 128  ;;  %s736_s6 = smov [#allocation5]  }
  0x43   : > { %p601_p9 = scmp.ne.s32.totalorder %s879_s9, %s600_s4  ;;  %s605_s7 = sshll.u32 %s736_s6, 4  ;;  %s606_s7 = int_to_ptr.vmem [resolvable:$false] %s605_s7 }
  0x44   : > { %s607_s21 = scalar_lea.vmem %s606_s7, 256  ;;  %p608_p5 = scmp.lt.s32.totalorder %s879_s9, %s606_s7 }
  0x45   : > { %p603_p12 = pnand %p601_p9, %p587_p3  ;;  %p609_p10 = scmp.lt.s32.totalorder %s607_s21, %s600_s4 }
  0x47   : > { %p604_p0 = pneg %p603_p12  ;;  %p610_p1 = por %p609_p10, %p608_p5 }
  0x49   : > { %p611_p2 = pnand %p610_p1, %p604_p0 }
  0x4b   : > { %614 = shalt.err (!%p611_p2)
}
  0x4c   : > { %492 = dma.hbm_to_vmem [thread:$0]  (!%p881_p11), %s877_s8, 128, %s879_s9, %s180_s29  }
  0x4d   : > { %p1043_p7 = scmp.ne.s32.totalorder %s1036_s24, 0 }
  0x4e   : > { %p1044_p3 = scmp.ne.s32.totalorder (!%p1043_p7), %s1032_s20, 0 }
  0x4f   : > { %203 = sbr.rel (%p1043_p7) target bundleno = 411 (0x19b), region = 28 }
  0x56   : > { %696 = dma.done.wait (%p1044_p3), [#allocation3], 64  }
  0x57   : > { %698 = vsyncadd (%p1044_p3), [#allocation3], 4294967232  ;;  %s917_s11 = sand.u32 1, %s717_s13   ;;  %p1045_p4 = scmp.ne.s32.totalorder %s1034_s22, 0 }
  0x58   : > { %s465_s18 = sshll.u32 %s917_s11, 3  ;;  %s210_s10 = scalar_lea.sflag [#allocation6], %s917_s11 }
  0x59   : > { %s213_s19 = scalar_lea.vmem [#allocation5], %s465_s18 }
  0x5a   : > { %700 = dma.done.wait (%p1045_p4), %s210_s10, 128  }
  0x5b   : > { %702 = vsyncadd (%p1045_p4), %s210_s10, 4294967168  ;;  %v737_v0 = vmov 0   ;;  %v251_v1 = vld [vmem:[#allocation2] sm:$0xf]  ;;  %s466_s20 = sshll.u32 %s917_s11, 2  ;;  %vm247_vm0 = vcmask 3072   ;;  %v259_v5 = vlaneseq }
  0x5c   : > { %556 = vset.pattern.permute.xlu0 %v737_v0  ;;  %s926_s24 = scalar_lea.vmem [#allocation7], %s466_s20  ;;  %v738_v2 = vmov 0.0   ;;  %v739_v3 = vmov 839922192   ;;  %v250_v10 = vld [vmem:[%s213_s19] sm:$0xff]  ;;  %vm269_vm1 = vcmask 1043456  }
  0x5d   : > { %254 = vperm.xlu0 %556, %v251_v1   ;;  %248 = vst.msk [vmem:[%s926_s24] sm:$0xf] %vm247_vm0, %v738_v2  ;;  %v257_v4 = vunpack.c.l.s4 %v739_v3  ;;  %v260_v7 = vshrl.u32 %v259_v5, 7  ;;  %s930_s22 = scalar_lea.vmem [#allocation8], %s466_s20  ;;  %s470_s8 = sshll.u32 %s725_s15, 6 }
  0x5e   : > { %249 = vst.msk [vmem:[%s930_s22] sm:$0xf] %vm247_vm0, %v738_v2  ;;  %s310_s9 = sshll.u32 %s926_s24, 4  ;;  %s324_s29 = sshll.u32 %s930_s22, 4  ;;  %s944_s9 = int_to_ptr.vmem [resolvable:$true] %s310_s9  ;;  %s953_s29 = int_to_ptr.vmem [resolvable:$true] %s324_s29 }
  0x5f   : > { %v258_v6 = vunpack.c.0.s8 %v257_v4  ;;  %s942_s30 = scalar_lea.hbm %s1026_s2, %s470_s8  ;;  %s951_s6 = scalar_lea.hbm %s1027_s3, %s470_s8 }
  0x60   : > { %s291_s7 = scalar_lea.sflag [#allocation4], %s917_s11  ;;  %s615_s21 = scalar_lea.vmem %s944_s9, 64 }
  0x61   : > { %v261_v8 = vsub.s32 %v258_v6, %v260_v7  ;;  %p616_p11 = scmp.ne.s32.totalorder %s944_s9, %s615_s21  ;;  %s740_s18 = smov [#allocation7]  }
  0x62   : > { %s619_s10 = sshll.u32 %s740_s18, 4  ;;  %s620_s10 = int_to_ptr.vmem [resolvable:$false] %s619_s10 }
  0x63   : > { %p617_p6 = pnand %p616_p11, %p863_p13  ;;  %s621_s19 = scalar_lea.vmem %s620_s10, 128 }
  0x64   : > { %v265_v22 = vld [vmem:[%s926_s24] sm:$0xf]  ;;  %p622_p9 = scmp.lt.s32.totalorder %s944_s9, %s620_s10  ;;  %p623_p12 = scmp.lt.s32.totalorder %s621_s19, %s615_s21 }
  0x65   : > { %v278_v24 = vld [vmem:[%s930_s22] sm:$0xf]  ;;  %p618_p8 = pneg %p617_p6 }
  0x66   : > { %p624_p0 = por %p623_p12, %p622_p9 }
  0x68   : > { %p625_p5 = pnand %p624_p0, %p618_p8 }
  0xdc   : > { %v255_v9 = vpop.permute.xlu0 %254 }
  0xdd   : > { %v262_v11 = vrot.slane %v255_v9, %v261_v8 }
  0xdf   : > { %v264_v12 = vsub.f32 %v250_v10, %v262_v11 }
  0xe1   : > { %v267_v13 = vcombine.high %v264_v12, %v264_v12  ;;  %v279_v14 = vmul.f32 %v264_v12, %v264_v12  ;;  %v270_v15 = vsel %vm269_vm1, %v264_v12, 0.0 }
  0xe3   : > { %v271_v16 = vsel %vm269_vm1, %v267_v13, 0.0  ;;  %v281_v17 = vcombine.high %v279_v14, %v279_v14  ;;  %v283_v19 = vsel %vm269_vm1, %v279_v14, 0.0 }
  0xe4   : > { %v272_v18 = vadd.f32 %v271_v16, %v270_v15 }
  0xe5   : > { %v284_v20 = vsel %vm269_vm1, %v281_v17, 0.0 }
  0xe6   : > { %273 = vadd.xlane.f32.xlu0 %v272_v18  ;;  %v285_v21 = vadd.f32 %v284_v20, %v283_v19 }
  0xe8   : > { %286 = vadd.xlane.f32.xlu1 %v285_v21 }
 0x173   : > { %v274_v23 = vpop.xlane.xlu0 %273 }
 0x174   : > { %v275_v25 = vadd.f32 %v274_v23, %v265_v22 }
 0x175   : > { %v287_v26 = vpop.xlane.xlu1 %286 }
 0x176   : > { %277 = vst.msk [vmem:[%s926_s24] sm:$0xf] %vm247_vm0, %v275_v25  ;;  %v288_v27 = vadd.f32 %v287_v26, %v278_v24 }
 0x177   : > { %628 = shalt.err (!%p625_p5)
}
 0x178   : > { %s629_s20 = scalar_lea.hbm %s942_s30, 64  ;;  %s633_s25 = scalar_lea.hbm %s1026_s2, 128 }
 0x179   : > { %p630_p10 = scmp.ne.s32.totalorder %s942_s30, %s629_s20  ;;  %p634_p7 = scmp.lt.u32.totalorder %s942_s30, %s1026_s2 }
 0x17a   : > { %p635_p3 = scmp.lt.u32.totalorder %s633_s25, %s629_s20  ;;  %p637_p11 = scmp.lt.u32.totalorder %s629_s20, %s942_s30 }
 0x17b   : > { %p631_p1 = pnand %p630_p10, %p863_p13 }
 0x17c   : > { %p636_p4 = por %p635_p3, %p634_p7 }
 0x17d   : > { %p632_p2 = pneg %p631_p1 }
 0x17e   : > { %p638_p6 = por %p637_p11, %p636_p4 }
 0x180   : > { %p639_p8 = pnand %p638_p6, %p632_p2 }
 0x182   : > { %642 = shalt.err (!%p639_p8)
}
 0x183   : > { %481 = dma.vmem_to_hbm [thread:$0]  (%p863_p13), %s944_s9, 64, %s942_s30, %s291_s7   ;;  %289 = vst.msk [vmem:[%s930_s22] sm:$0xf] %vm247_vm0, %v288_v27 }
 0x184   : > { %s296_s4 = scalar_lea.sflag [#allocation9], %s917_s11  ;;  %s643_s21 = scalar_lea.vmem %s953_s29, 64 }
 0x185   : > { %p644_p9 = scmp.ne.s32.totalorder %s953_s29, %s643_s21  ;;  %s741_s18 = smov [#allocation8]  }
 0x186   : > { %s647_s10 = sshll.u32 %s741_s18, 4  ;;  %s648_s10 = int_to_ptr.vmem [resolvable:$false] %s647_s10 }
 0x187   : > { %p645_p12 = pnand %p644_p9, %p863_p13  ;;  %s649_s19 = scalar_lea.vmem %s648_s10, 128 }
 0x188   : > { %p650_p5 = scmp.lt.s32.totalorder %s953_s29, %s648_s10  ;;  %p651_p10 = scmp.lt.s32.totalorder %s649_s19, %s643_s21 }
 0x189   : > { %p646_p0 = pneg %p645_p12 }
 0x18a   : > { %p652_p1 = por %p651_p10, %p650_p5 }
 0x18c   : > { %p653_p2 = pnand %p652_p1, %p646_p0 }
 0x18e   : > { %656 = shalt.err (!%p653_p2)
}
 0x18f   : > { %s657_s11 = scalar_lea.hbm %s951_s6, 64  ;;  %s661_s30 = scalar_lea.hbm %s1027_s3, 128 }
 0x190   : > { %p658_p7 = scmp.ne.s32.totalorder %s951_s6, %s657_s11  ;;  %p662_p11 = scmp.lt.u32.totalorder %s951_s6, %s1027_s3 }
 0x191   : > { %p663_p6 = scmp.lt.u32.totalorder %s661_s30, %s657_s11  ;;  %p665_p9 = scmp.lt.u32.totalorder %s657_s11, %s951_s6 }
 0x192   : > { %p659_p3 = pnand %p658_p7, %p863_p13 }
 0x193   : > { %p664_p8 = por %p663_p6, %p662_p11 }
 0x194   : > { %p660_p4 = pneg %p659_p3 }
 0x195   : > { %p666_p12 = por %p665_p9, %p664_p8 }
 0x197   : > { %p667_p0 = pnand %p666_p12, %p660_p4 }
 0x199   : > { %670 = shalt.err (!%p667_p0)
}
 0x19a   : > { %482 = dma.vmem_to_hbm [thread:$0]  (%p863_p13), %s953_s29, 64, %s951_s6, %s296_s4  }
 0x19b PF: > { %s336_s24 = sand.u32 1, %s713_s12   ;;  %p1046_p5 = scmp.ne.s32.totalorder %s1035_s23, 0 }
 0x19c   : > { %p1047_p10 = scmp.ge.s32.totalorder %s733_s17, 2  ;;  %s337_s8 = scalar_lea.sflag [#allocation4], %s336_s24 }
 0x19e   : > { %p494_p1 = pnand %p1047_p10, %p1046_p5 }
 0x1a0   : > { %704 = dma.done.wait (!%p494_p1), %s337_s8, 64  }
 0x1a1   : > { %706 = vsyncadd (!%p494_p1), %s337_s8, 4294967232  ;;  %s346_s25 = scalar_lea.sflag [#allocation9], %s336_s24 }
 0x1a2   : > { %708 = dma.done.wait (!%p494_p1), %s346_s25, 64  }
 0x1a3   : > { %710 = vsyncadd (!%p494_p1), %s346_s25, 4294967232  ;;  %s24_s17 = sadd.s32 1, %s733_s17   ;;  %s1048_s12 = smov %s717_s13 }
 0x1a4   : > { %p21_p2 = scmp.ge.s32.totalorder %s24_s17, 4   ;;  %s1049_s13 = smov %s721_s14 }
 0x1a5   : > { %s1050_s14 = smov %s871_s5  ;;  %s1051_s15 = smov %s729_s16 }
 0x1a6   : > { %s1052_s16 = smov %s1054_s28  ;;  %23 = sbr.rel (!%p21_p2) target bundleno = 9 (0x9), region = 99 }
 0x1ad   :  { %351 = vsyncpa [#allocation3], 1 }
 0x1ae   :  { %353 = vsyncpa [#allocation3 + $0x1], 1 }
 0x1af   :  { %354 = vsyncpa [#allocation6], 1 }
 0x1b0   :  { %356 = vsyncpa [#allocation6 + $0x1], 1 }
 0x1b1   :  { %357 = vsyncpa [#allocation4], 1 }
 0x1b2   :  { %359 = vsyncpa [#allocation4 + $0x1], 1 }
 0x1b3   :  { %360 = vsyncpa [#allocation9], 1 }
 0x1b4   :  { %362 = vsyncpa [#allocation9 + $0x1], 1 }

</bundles_post_ra>
